<compile_context>
chip_gen: v7x
topology: tpu7x:2x2x1
jax: 0.10.0
libtpu: 0.0.40
codegen_flags: <defaults>
</compile_context>

<pallas_src>
import functools

import jax
import jax.numpy as jnp
import numpy as np
from jax.experimental import pallas as pl
from jax.experimental.pallas import tpu as pltpu


def _mpnn_kernel(w_ref, x_ref, mask_ref, rowsel_ref, expand_ref, fold_ref,
                 wih_ref, whh_ref, bih_ref, bhh_ref, out_ref,
                 *, n, hidden, mpnn_steps):
    H = hidden

    h = x_ref[...].astype(jnp.float32)           # (n, H)  carried node state, f32
    mask = mask_ref[...].astype(jnp.float32)     # (n, H)  node mask (broadcast over H)
    w = w_ref[...]                               # (nH, nH) bf16, 1/n^2 folded in
    rowsel = rowsel_ref[...]                     # (n, nH) f32 0/1: [j == m // H]
    expand = expand_ref[...]                     # (H, nH) bf16 0/1: [k == m %  H]
    fold = fold_ref[...]                         # (nH, H) bf16 0/1: [m % H == h]
    wih = wih_ref[...]                           # (H, 3H) f32  (r|z|n along lanes)
    whh = whh_ref[...]                           # (H, 3H) f32
    bih = bih_ref[...]                           # (1, 3H) f32
    bhh = bhh_ref[...]                           # (1, 3H) f32

    # mpnn_steps is a small static count -> unrolled Python loop.
    for _ in range(mpnn_steps):
        # ---- flatten h: (n, H) -> (1, n*H), no in-kernel reshape -----------
        # (h @ expand)[j, m] = h[j, m % H]; rowsel picks the j == m // H row,
        # so the row-sum is an exact selection (single nonzero term per lane).
        tiled = jnp.dot(h.astype(jnp.bfloat16), expand,
                        preferred_element_type=jnp.float32)            # (n, nH)
        h_flat = jnp.sum(tiled * rowsel, axis=0, keepdims=True)        # (1, nH)

        # ---- message matvec on the MXU (bf16 operands, f32 accumulate) -----
        # msg_flat[0, j*H+h'] = (1/n^2) * sum_{i,k} edge_wgt[b,i,j,h',k] * h[i,k]
        msg_flat = jnp.dot(h_flat.astype(jnp.bfloat16), w,
                           preferred_element_type=jnp.float32)         # (1, nH)

        # ---- unflatten messages: (1, n*H) -> (n, H) via 0/1 selector matmul
        msg_rows = jnp.broadcast_to(msg_flat, rowsel.shape) * rowsel   # (n, nH)
        msg = jnp.dot(msg_rows.astype(jnp.bfloat16), fold,
                      preferred_element_type=jnp.float32)              # (n, H)

        # ---- GRUCell update in per-node (n, H) layout, f32 gate math -------
        gi = jnp.dot(msg, wih, preferred_element_type=jnp.float32) + bih   # (n, 3H)
        gh = jnp.dot(h, whh, preferred_element_type=jnp.float32) + bhh     # (n, 3H)
        r = jax.nn.sigmoid(gi[:, 0:H] + gh[:, 0:H])
        z = jax.nn.sigmoid(gi[:, H:2 * H] + gh[:, H:2 * H])
        g = jnp.tanh(gi[:, 2 * H:] + r * gh[:, 2 * H:])
        h = ((1.0 - z) * g + z * h) * mask

    out_ref[...] = h.astype(out_ref.dtype)       # (n, H) per-batch store


def mpnn_forward(edge_wgt, nodes_embed, mask, params, *, mpnn_steps):
    B, n, _, H, _ = edge_wgt.shape
    nH = n * H

    # --- wrapper glue (one-time layout work, no per-step cost) -------------
    # Message-weight operand: W[b, i*H+k, j*H+h] = edge_wgt[b,i,j,h,k] / n^2,
    # cast to bf16 so the kernel streams half the HBM bytes and skips the
    # per-step scale multiply.
    inv_n2 = 1.0 / float(n * n)
    w = (jnp.transpose(edge_wgt, (0, 1, 4, 2, 3)) * inv_n2).astype(jnp.bfloat16)
    w = w.reshape(B, nH, nH)

    mask_full = jnp.broadcast_to(mask, (B, n, H)).astype(nodes_embed.dtype)

    # 0/1 selector constants implementing the (n,H) <-> (1,n*H) relayouts with
    # plain matmul / mask / row-sum ops (no in-kernel reshapes).
    eye_h = jnp.eye(H, dtype=jnp.bfloat16)
    expand = jnp.tile(eye_h, (1, n))                                   # (H, nH)
    fold = jnp.tile(eye_h, (n, 1))                                     # (nH, H)
    rowsel = jnp.repeat(jnp.eye(n, dtype=jnp.float32), H, axis=1)      # (n, nH)

    # Per-node GRUCell weights (transposed, r|z|n along lanes) and biases.
    wih_t = jnp.asarray(params["weight_ih"], jnp.float32).T            # (H, 3H)
    whh_t = jnp.asarray(params["weight_hh"], jnp.float32).T            # (H, 3H)
    bih = jnp.asarray(params["bias_ih"], jnp.float32).reshape(1, 3 * H)
    bhh = jnp.asarray(params["bias_hh"], jnp.float32).reshape(1, 3 * H)

    # Explicit VMEM budget (double-buffered per-batch blocks + resident
    # constants + headroom), capped at 64 MiB so the limit is valid on v7x.
    per_batch_bytes = nH * nH * 2 + 3 * n * H * 4          # W + nodes/mask/out
    const_bytes = (n * nH * 4 + 2 * nH * H * 2             # rowsel + expand/fold
                   + 2 * H * 3 * H * 4 + 2 * 3 * H * 4)    # gate weights + biases
    vmem_needed = 2 * per_batch_bytes + 2 * const_bytes
    vmem_limit = int(min(max(vmem_needed + (4 << 20), 32 << 20), 64 << 20))

    kernel = functools.partial(_mpnn_kernel, n=n, hidden=H, mpnn_steps=mpnn_steps)

    out = pl.pallas_call(
        kernel,
        out_shape=jax.ShapeDtypeStruct((B, n, H), nodes_embed.dtype),
        grid=(B,),
        in_specs=[
            pl.BlockSpec((None, nH, nH), lambda b: (b, 0, 0)),   # message weights (bf16)
            pl.BlockSpec((None, n, H), lambda b: (b, 0, 0)),     # node state
            pl.BlockSpec((None, n, H), lambda b: (b, 0, 0)),     # mask
            pl.BlockSpec((n, nH), lambda b: (0, 0)),             # rowsel 0/1
            pl.BlockSpec((H, nH), lambda b: (0, 0)),             # expand 0/1
            pl.BlockSpec((nH, H), lambda b: (0, 0)),             # fold 0/1
            pl.BlockSpec((H, 3 * H), lambda b: (0, 0)),          # W_ih^T
            pl.BlockSpec((H, 3 * H), lambda b: (0, 0)),          # W_hh^T
            pl.BlockSpec((1, 3 * H), lambda b: (0, 0)),          # b_ih
            pl.BlockSpec((1, 3 * H), lambda b: (0, 0)),          # b_hh
        ],
        out_specs=pl.BlockSpec((None, n, H), lambda b: (b, 0, 0)),
        compiler_params=pltpu.CompilerParams(
            dimension_semantics=("parallel",),
            vmem_limit_bytes=vmem_limit,
        ),
    )(w, nodes_embed, mask_full, rowsel, expand, fold, wih_t, whh_t, bih, bhh)

    return out


def mpnn_reference(edge_wgt, nodes_embed, mask, params, *, mpnn_steps):
    """Pure-JAX reference matching the (intended) PyTorch forward."""
    B, n, _, H, _ = edge_wgt.shape
    wih, whh = params["weight_ih"], params["weight_hh"]
    bih, bhh = params["bias_ih"], params["bias_hh"]
    h = nodes_embed
    for _ in range(mpnn_steps):
        msg = jnp.einsum("bijhk,bik->bjh", edge_wgt, h) / (n * n)
        x2 = msg.reshape(-1, H)
        h2 = h.reshape(-1, H)
        gi = x2 @ wih.T + bih
        gh = h2 @ whh.T + bhh
        i_r, i_z, i_n = jnp.split(gi, 3, axis=1)
        h_r, h_z, h_n = jnp.split(gh, 3, axis=1)
        r = jax.nn.sigmoid(i_r + h_r)
        z = jax.nn.sigmoid(i_z + h_z)
        g = jnp.tanh(i_n + r * h_n)
        hn = (1.0 - z) * g + z * h2
        h = hn.reshape(B, n, H) * mask
    return h


if __name__ == "__main__":
    B, n_max, H, steps = 2, 8, 16, 3   # n_max * H = 128 (lane-aligned)

    key = jax.random.PRNGKey(0)
    k1, k2, k3, k4, k5, k6, k7 = jax.random.split(key, 7)

    edge_wgt = 0.1 * jax.random.normal(k1, (B, n_max, n_max, H, H), jnp.float32)
    nodes = jax.random.normal(k2, (B, n_max, H), jnp.float32)
    mask = (jax.random.uniform(k3, (B, n_max, 1)) > 0.2).astype(jnp.float32)

    # PyTorch-style GRUCell parameters: uniform(-1/sqrt(H), 1/sqrt(H))
    bound = 1.0 / float(np.sqrt(H))
    params = {
        "weight_ih": jax.random.uniform(k4, (3 * H, H), jnp.float32, -bound, bound),
        "weight_hh": jax.random.uniform(k5, (3 * H, H), jnp.float32, -bound, bound),
        "bias_ih": jax.random.uniform(k6, (3 * H,), jnp.float32, -bound, bound),
        "bias_hh": jax.random.uniform(k7, (3 * H,), jnp.float32, -bound, bound),
    }

    out = mpnn_forward(edge_wgt, nodes, mask, params, mpnn_steps=steps)
    out = jax.block_until_ready(out)

    ref = mpnn_reference(edge_wgt, nodes, mask, params, mpnn_steps=steps)
    np.testing.assert_allclose(np.asarray(out), np.asarray(ref), rtol=2e-2, atol=1e-2)

    print("KERNEL_OK")
</pallas_src>

<mosaic_0001>
module attributes {stable_mosaic.version = 11 : i64} {
  func.func @_mpnn_kernel(%arg0: i32, %arg1: memref<1x128x128xbf16, #tpu.memory_space<vmem>>, %arg2: memref<1x8x16xf32, #tpu.memory_space<vmem>>, %arg3: memref<1x8x16xf32, #tpu.memory_space<vmem>>, %arg4: memref<8x128xf32, #tpu.memory_space<vmem>>, %arg5: memref<16x128xbf16, #tpu.memory_space<vmem>>, %arg6: memref<128x16xbf16, #tpu.memory_space<vmem>>, %arg7: memref<16x48xf32, #tpu.memory_space<vmem>>, %arg8: memref<16x48xf32, #tpu.memory_space<vmem>>, %arg9: memref<1x48xf32, #tpu.memory_space<vmem>>, %arg10: memref<1x48xf32, #tpu.memory_space<vmem>>, %arg11: memref<1x8x16xf32, #tpu.memory_space<vmem>>) attributes {dimension_semantics = [#tpu.dimension_semantics<parallel>], iteration_bounds = array<i64: 2>, scalar_prefetch = 0 : i64, scratch_operands = 0 : i64, tpu.core_type = #tpu.core_type<tc>, window_params = [{transform_indices = @transform_0, window_bounds = array<i64: 1, 128, 128>}, {transform_indices = @transform_1, window_bounds = array<i64: 1, 8, 16>}, {transform_indices = @transform_2, window_bounds = array<i64: 1, 8, 16>}, {pipeline_mode = #tpu.pipeline_mode<synchronous>, transform_indices = @transform_3, window_bounds = array<i64: 8, 128>}, {pipeline_mode = #tpu.pipeline_mode<synchronous>, transform_indices = @transform_4, window_bounds = array<i64: 16, 128>}, {pipeline_mode = #tpu.pipeline_mode<synchronous>, transform_indices = @transform_5, window_bounds = array<i64: 128, 16>}, {pipeline_mode = #tpu.pipeline_mode<synchronous>, transform_indices = @transform_6, window_bounds = array<i64: 16, 48>}, {pipeline_mode = #tpu.pipeline_mode<synchronous>, transform_indices = @transform_7, window_bounds = array<i64: 16, 48>}, {pipeline_mode = #tpu.pipeline_mode<synchronous>, transform_indices = @transform_8, window_bounds = array<i64: 1, 48>}, {pipeline_mode = #tpu.pipeline_mode<synchronous>, transform_indices = @transform_9, window_bounds = array<i64: 1, 48>}, {transform_indices = @transform_10, window_bounds = array<i64: 1, 8, 16>}]} {
    %c0 = arith.constant 0 : index
    %c0_0 = arith.constant 0 : index
    %c0_1 = arith.constant 0 : index
    %0 = vector.load %arg2[%c0, %c0_0, %c0_1] : memref<1x8x16xf32, #tpu.memory_space<vmem>>, vector<1x8x16xf32>
    %1 = vector.shape_cast %0 : vector<1x8x16xf32> to vector<8x16xf32>
    %c0_2 = arith.constant 0 : index
    %c0_3 = arith.constant 0 : index
    %c0_4 = arith.constant 0 : index
    %2 = vector.load %arg3[%c0_2, %c0_3, %c0_4] : memref<1x8x16xf32, #tpu.memory_space<vmem>>, vector<1x8x16xf32>
    %3 = vector.shape_cast %2 : vector<1x8x16xf32> to vector<8x16xf32>
    %c0_5 = arith.constant 0 : index
    %c0_6 = arith.constant 0 : index
    %c0_7 = arith.constant 0 : index
    %4 = vector.load %arg1[%c0_5, %c0_6, %c0_7] : memref<1x128x128xbf16, #tpu.memory_space<vmem>>, vector<1x128x128xbf16>
    %5 = vector.shape_cast %4 : vector<1x128x128xbf16> to vector<128x128xbf16>
    %c0_8 = arith.constant 0 : index
    %c0_9 = arith.constant 0 : index
    %6 = vector.load %arg4[%c0_8, %c0_9] : memref<8x128xf32, #tpu.memory_space<vmem>>, vector<8x128xf32>
    %c0_10 = arith.constant 0 : index
    %c0_11 = arith.constant 0 : index
    %7 = vector.load %arg5[%c0_10, %c0_11] : memref<16x128xbf16, #tpu.memory_space<vmem>>, vector<16x128xbf16>
    %c0_12 = arith.constant 0 : index
    %c0_13 = arith.constant 0 : index
    %8 = vector.load %arg6[%c0_12, %c0_13] : memref<128x16xbf16, #tpu.memory_space<vmem>>, vector<128x16xbf16>
    %c0_14 = arith.constant 0 : index
    %c0_15 = arith.constant 0 : index
    %9 = vector.load %arg7[%c0_14, %c0_15] : memref<16x48xf32, #tpu.memory_space<vmem>>, vector<16x48xf32>
    %c0_16 = arith.constant 0 : index
    %c0_17 = arith.constant 0 : index
    %10 = vector.load %arg8[%c0_16, %c0_17] : memref<16x48xf32, #tpu.memory_space<vmem>>, vector<16x48xf32>
    %c0_18 = arith.constant 0 : index
    %c0_19 = arith.constant 0 : index
    %11 = vector.load %arg9[%c0_18, %c0_19] : memref<1x48xf32, #tpu.memory_space<vmem>>, vector<1x48xf32>
    %c0_20 = arith.constant 0 : index
    %c0_21 = arith.constant 0 : index
    %12 = vector.load %arg10[%c0_20, %c0_21] : memref<1x48xf32, #tpu.memory_space<vmem>>, vector<1x48xf32>
    %13 = arith.truncf %1 : vector<8x16xf32> to vector<8x16xbf16>
    %cst = arith.constant dense<0.000000e+00> : vector<8x128xf32>
    %14 = tpu.matmul %13, %7, %cst {dimension_numbers = #tpu.dot_dimension_numbers<[1], [0], [0], [1], [0, 0, 1, 1], [], []>} : vector<8x16xbf16>, vector<16x128xbf16>, vector<8x128xf32> -> vector<8x128xf32>
    %15 = arith.mulf %14, %6 : vector<8x128xf32>
    %cst_22 = arith.constant dense<0.000000e+00> : vector<128xf32>
    %16 = vector.multi_reduction <add>, %15, %cst_22 [0] : vector<8x128xf32> to vector<128xf32>
    %17 = vector.shape_cast %16 : vector<128xf32> to vector<1x128xf32>
    %18 = arith.truncf %17 : vector<1x128xf32> to vector<1x128xbf16>
    %cst_23 = arith.constant dense<0.000000e+00> : vector<1x128xf32>
    %19 = tpu.matmul %18, %5, %cst_23 {dimension_numbers = #tpu.dot_dimension_numbers<[1], [0], [0], [1], [0, 0, 1, 1], [], []>} : vector<1x128xbf16>, vector<128x128xbf16>, vector<1x128xf32> -> vector<1x128xf32>
    %20 = vector.shape_cast %19 : vector<1x128xf32> to vector<1x128xf32>
    %21 = vector.broadcast %20 : vector<1x128xf32> to vector<8x128xf32>
    %22 = arith.mulf %21, %6 : vector<8x128xf32>
    %23 = arith.truncf %22 : vector<8x128xf32> to vector<8x128xbf16>
    %cst_24 = arith.constant dense<0.000000e+00> : vector<8x16xf32>
    %24 = tpu.matmul %23, %8, %cst_24 {dimension_numbers = #tpu.dot_dimension_numbers<[1], [0], [0], [1], [0, 0, 1, 1], [], []>} : vector<8x128xbf16>, vector<128x16xbf16>, vector<8x16xf32> -> vector<8x16xf32>
    %cst_25 = arith.constant dense<0.000000e+00> : vector<8x48xf32>
    %25 = tpu.matmul %24, %9, %cst_25 {dimension_numbers = #tpu.dot_dimension_numbers<[1], [0], [0], [1], [0, 0, 1, 1], [], []>} : vector<8x16xf32>, vector<16x48xf32>, vector<8x48xf32> -> vector<8x48xf32>
    %26 = vector.broadcast %11 : vector<1x48xf32> to vector<8x48xf32>
    %27 = arith.addf %25, %26 : vector<8x48xf32>
    %cst_26 = arith.constant dense<0.000000e+00> : vector<8x48xf32>
    %28 = tpu.matmul %1, %10, %cst_26 {dimension_numbers = #tpu.dot_dimension_numbers<[1], [0], [0], [1], [0, 0, 1, 1], [], []>} : vector<8x16xf32>, vector<16x48xf32>, vector<8x48xf32> -> vector<8x48xf32>
    %29 = vector.broadcast %12 : vector<1x48xf32> to vector<8x48xf32>
    %30 = arith.addf %28, %29 : vector<8x48xf32>
    %31 = vector.extract_strided_slice %27 {offsets = [0, 0], sizes = [8, 16], strides = [1, 1]} : vector<8x48xf32> to vector<8x16xf32>
    %32 = vector.extract_strided_slice %30 {offsets = [0, 0], sizes = [8, 16], strides = [1, 1]} : vector<8x48xf32> to vector<8x16xf32>
    %33 = arith.addf %31, %32 : vector<8x16xf32>
    %34 = arith.negf %33 : vector<8x16xf32>
    %35 = math.exp %34 : vector<8x16xf32>
    %cst_27 = arith.constant 1.000000e+00 : f32
    %36 = vector.broadcast %cst_27 : f32 to vector<8x16xf32>
    %37 = arith.addf %36, %35 : vector<8x16xf32>
    %38 = arith.divf %36, %37 : vector<8x16xf32>
    %39 = vector.extract_strided_slice %27 {offsets = [0, 16], sizes = [8, 16], strides = [1, 1]} : vector<8x48xf32> to vector<8x16xf32>
    %40 = vector.extract_strided_slice %30 {offsets = [0, 16], sizes = [8, 16], strides = [1, 1]} : vector<8x48xf32> to vector<8x16xf32>
    %41 = arith.addf %39, %40 : vector<8x16xf32>
    %42 = arith.negf %41 : vector<8x16xf32>
    %43 = math.exp %42 : vector<8x16xf32>
    %cst_28 = arith.constant 1.000000e+00 : f32
    %44 = vector.broadcast %cst_28 : f32 to vector<8x16xf32>
    %45 = arith.addf %44, %43 : vector<8x16xf32>
    %46 = arith.divf %44, %45 : vector<8x16xf32>
    %47 = vector.extract_strided_slice %27 {offsets = [0, 32], sizes = [8, 16], strides = [1, 1]} : vector<8x48xf32> to vector<8x16xf32>
    %48 = vector.extract_strided_slice %30 {offsets = [0, 32], sizes = [8, 16], strides = [1, 1]} : vector<8x48xf32> to vector<8x16xf32>
    %49 = arith.mulf %38, %48 : vector<8x16xf32>
    %50 = arith.addf %47, %49 : vector<8x16xf32>
    %51 = math.tanh %50 : vector<8x16xf32>
    %cst_29 = arith.constant 1.000000e+00 : f32
    %52 = vector.broadcast %cst_29 : f32 to vector<8x16xf32>
    %53 = arith.subf %52, %46 : vector<8x16xf32>
    %54 = arith.mulf %53, %51 : vector<8x16xf32>
    %55 = arith.mulf %46, %1 : vector<8x16xf32>
    %56 = arith.addf %54, %55 : vector<8x16xf32>
    %57 = arith.mulf %56, %3 : vector<8x16xf32>
    %58 = arith.truncf %57 : vector<8x16xf32> to vector<8x16xbf16>
    %cst_30 = arith.constant dense<0.000000e+00> : vector<8x128xf32>
    %59 = tpu.matmul %58, %7, %cst_30 {dimension_numbers = #tpu.dot_dimension_numbers<[1], [0], [0], [1], [0, 0, 1, 1], [], []>} : vector<8x16xbf16>, vector<16x128xbf16>, vector<8x128xf32> -> vector<8x128xf32>
    %60 = arith.mulf %59, %6 : vector<8x128xf32>
    %cst_31 = arith.constant dense<0.000000e+00> : vector<128xf32>
    %61 = vector.multi_reduction <add>, %60, %cst_31 [0] : vector<8x128xf32> to vector<128xf32>
    %62 = vector.shape_cast %61 : vector<128xf32> to vector<1x128xf32>
    %63 = arith.truncf %62 : vector<1x128xf32> to vector<1x128xbf16>
    %cst_32 = arith.constant dense<0.000000e+00> : vector<1x128xf32>
    %64 = tpu.matmul %63, %5, %cst_32 {dimension_numbers = #tpu.dot_dimension_numbers<[1], [0], [0], [1], [0, 0, 1, 1], [], []>} : vector<1x128xbf16>, vector<128x128xbf16>, vector<1x128xf32> -> vector<1x128xf32>
    %65 = vector.shape_cast %64 : vector<1x128xf32> to vector<1x128xf32>
    %66 = vector.broadcast %65 : vector<1x128xf32> to vector<8x128xf32>
    %67 = arith.mulf %66, %6 : vector<8x128xf32>
    %68 = arith.truncf %67 : vector<8x128xf32> to vector<8x128xbf16>
    %cst_33 = arith.constant dense<0.000000e+00> : vector<8x16xf32>
    %69 = tpu.matmul %68, %8, %cst_33 {dimension_numbers = #tpu.dot_dimension_numbers<[1], [0], [0], [1], [0, 0, 1, 1], [], []>} : vector<8x128xbf16>, vector<128x16xbf16>, vector<8x16xf32> -> vector<8x16xf32>
    %cst_34 = arith.constant dense<0.000000e+00> : vector<8x48xf32>
    %70 = tpu.matmul %69, %9, %cst_34 {dimension_numbers = #tpu.dot_dimension_numbers<[1], [0], [0], [1], [0, 0, 1, 1], [], []>} : vector<8x16xf32>, vector<16x48xf32>, vector<8x48xf32> -> vector<8x48xf32>
    %71 = vector.broadcast %11 : vector<1x48xf32> to vector<8x48xf32>
    %72 = arith.addf %70, %71 : vector<8x48xf32>
    %cst_35 = arith.constant dense<0.000000e+00> : vector<8x48xf32>
    %73 = tpu.matmul %57, %10, %cst_35 {dimension_numbers = #tpu.dot_dimension_numbers<[1], [0], [0], [1], [0, 0, 1, 1], [], []>} : vector<8x16xf32>, vector<16x48xf32>, vector<8x48xf32> -> vector<8x48xf32>
    %74 = vector.broadcast %12 : vector<1x48xf32> to vector<8x48xf32>
    %75 = arith.addf %73, %74 : vector<8x48xf32>
    %76 = vector.extract_strided_slice %72 {offsets = [0, 0], sizes = [8, 16], strides = [1, 1]} : vector<8x48xf32> to vector<8x16xf32>
    %77 = vector.extract_strided_slice %75 {offsets = [0, 0], sizes = [8, 16], strides = [1, 1]} : vector<8x48xf32> to vector<8x16xf32>
    %78 = arith.addf %76, %77 : vector<8x16xf32>
    %79 = arith.negf %78 : vector<8x16xf32>
    %80 = math.exp %79 : vector<8x16xf32>
    %cst_36 = arith.constant 1.000000e+00 : f32
    %81 = vector.broadcast %cst_36 : f32 to vector<8x16xf32>
    %82 = arith.addf %81, %80 : vector<8x16xf32>
    %83 = arith.divf %81, %82 : vector<8x16xf32>
    %84 = vector.extract_strided_slice %72 {offsets = [0, 16], sizes = [8, 16], strides = [1, 1]} : vector<8x48xf32> to vector<8x16xf32>
    %85 = vector.extract_strided_slice %75 {offsets = [0, 16], sizes = [8, 16], strides = [1, 1]} : vector<8x48xf32> to vector<8x16xf32>
    %86 = arith.addf %84, %85 : vector<8x16xf32>
    %87 = arith.negf %86 : vector<8x16xf32>
    %88 = math.exp %87 : vector<8x16xf32>
    %cst_37 = arith.constant 1.000000e+00 : f32
    %89 = vector.broadcast %cst_37 : f32 to vector<8x16xf32>
    %90 = arith.addf %89, %88 : vector<8x16xf32>
    %91 = arith.divf %89, %90 : vector<8x16xf32>
    %92 = vector.extract_strided_slice %72 {offsets = [0, 32], sizes = [8, 16], strides = [1, 1]} : vector<8x48xf32> to vector<8x16xf32>
    %93 = vector.extract_strided_slice %75 {offsets = [0, 32], sizes = [8, 16], strides = [1, 1]} : vector<8x48xf32> to vector<8x16xf32>
    %94 = arith.mulf %83, %93 : vector<8x16xf32>
    %95 = arith.addf %92, %94 : vector<8x16xf32>
    %96 = math.tanh %95 : vector<8x16xf32>
    %cst_38 = arith.constant 1.000000e+00 : f32
    %97 = vector.broadcast %cst_38 : f32 to vector<8x16xf32>
    %98 = arith.subf %97, %91 : vector<8x16xf32>
    %99 = arith.mulf %98, %96 : vector<8x16xf32>
    %100 = arith.mulf %91, %57 : vector<8x16xf32>
    %101 = arith.addf %99, %100 : vector<8x16xf32>
    %102 = arith.mulf %101, %3 : vector<8x16xf32>
    %103 = arith.truncf %102 : vector<8x16xf32> to vector<8x16xbf16>
    %cst_39 = arith.constant dense<0.000000e+00> : vector<8x128xf32>
    %104 = tpu.matmul %103, %7, %cst_39 {dimension_numbers = #tpu.dot_dimension_numbers<[1], [0], [0], [1], [0, 0, 1, 1], [], []>} : vector<8x16xbf16>, vector<16x128xbf16>, vector<8x128xf32> -> vector<8x128xf32>
    %105 = arith.mulf %104, %6 : vector<8x128xf32>
    %cst_40 = arith.constant dense<0.000000e+00> : vector<128xf32>
    %106 = vector.multi_reduction <add>, %105, %cst_40 [0] : vector<8x128xf32> to vector<128xf32>
    %107 = vector.shape_cast %106 : vector<128xf32> to vector<1x128xf32>
    %108 = arith.truncf %107 : vector<1x128xf32> to vector<1x128xbf16>
    %cst_41 = arith.constant dense<0.000000e+00> : vector<1x128xf32>
    %109 = tpu.matmul %108, %5, %cst_41 {dimension_numbers = #tpu.dot_dimension_numbers<[1], [0], [0], [1], [0, 0, 1, 1], [], []>} : vector<1x128xbf16>, vector<128x128xbf16>, vector<1x128xf32> -> vector<1x128xf32>
    %110 = vector.shape_cast %109 : vector<1x128xf32> to vector<1x128xf32>
    %111 = vector.broadcast %110 : vector<1x128xf32> to vector<8x128xf32>
    %112 = arith.mulf %111, %6 : vector<8x128xf32>
    %113 = arith.truncf %112 : vector<8x128xf32> to vector<8x128xbf16>
    %cst_42 = arith.constant dense<0.000000e+00> : vector<8x16xf32>
    %114 = tpu.matmul %113, %8, %cst_42 {dimension_numbers = #tpu.dot_dimension_numbers<[1], [0], [0], [1], [0, 0, 1, 1], [], []>} : vector<8x128xbf16>, vector<128x16xbf16>, vector<8x16xf32> -> vector<8x16xf32>
    %cst_43 = arith.constant dense<0.000000e+00> : vector<8x48xf32>
    %115 = tpu.matmul %114, %9, %cst_43 {dimension_numbers = #tpu.dot_dimension_numbers<[1], [0], [0], [1], [0, 0, 1, 1], [], []>} : vector<8x16xf32>, vector<16x48xf32>, vector<8x48xf32> -> vector<8x48xf32>
    %116 = vector.broadcast %11 : vector<1x48xf32> to vector<8x48xf32>
    %117 = arith.addf %115, %116 : vector<8x48xf32>
    %cst_44 = arith.constant dense<0.000000e+00> : vector<8x48xf32>
    %118 = tpu.matmul %102, %10, %cst_44 {dimension_numbers = #tpu.dot_dimension_numbers<[1], [0], [0], [1], [0, 0, 1, 1], [], []>} : vector<8x16xf32>, vector<16x48xf32>, vector<8x48xf32> -> vector<8x48xf32>
    %119 = vector.broadcast %12 : vector<1x48xf32> to vector<8x48xf32>
    %120 = arith.addf %118, %119 : vector<8x48xf32>
    %121 = vector.extract_strided_slice %117 {offsets = [0, 0], sizes = [8, 16], strides = [1, 1]} : vector<8x48xf32> to vector<8x16xf32>
    %122 = vector.extract_strided_slice %120 {offsets = [0, 0], sizes = [8, 16], strides = [1, 1]} : vector<8x48xf32> to vector<8x16xf32>
    %123 = arith.addf %121, %122 : vector<8x16xf32>
    %124 = arith.negf %123 : vector<8x16xf32>
    %125 = math.exp %124 : vector<8x16xf32>
    %cst_45 = arith.constant 1.000000e+00 : f32
    %126 = vector.broadcast %cst_45 : f32 to vector<8x16xf32>
    %127 = arith.addf %126, %125 : vector<8x16xf32>
    %128 = arith.divf %126, %127 : vector<8x16xf32>
    %129 = vector.extract_strided_slice %117 {offsets = [0, 16], sizes = [8, 16], strides = [1, 1]} : vector<8x48xf32> to vector<8x16xf32>
    %130 = vector.extract_strided_slice %120 {offsets = [0, 16], sizes = [8, 16], strides = [1, 1]} : vector<8x48xf32> to vector<8x16xf32>
    %131 = arith.addf %129, %130 : vector<8x16xf32>
    %132 = arith.negf %131 : vector<8x16xf32>
    %133 = math.exp %132 : vector<8x16xf32>
    %cst_46 = arith.constant 1.000000e+00 : f32
    %134 = vector.broadcast %cst_46 : f32 to vector<8x16xf32>
    %135 = arith.addf %134, %133 : vector<8x16xf32>
    %136 = arith.divf %134, %135 : vector<8x16xf32>
    %137 = vector.extract_strided_slice %117 {offsets = [0, 32], sizes = [8, 16], strides = [1, 1]} : vector<8x48xf32> to vector<8x16xf32>
    %138 = vector.extract_strided_slice %120 {offsets = [0, 32], sizes = [8, 16], strides = [1, 1]} : vector<8x48xf32> to vector<8x16xf32>
    %139 = arith.mulf %128, %138 : vector<8x16xf32>
    %140 = arith.addf %137, %139 : vector<8x16xf32>
    %141 = math.tanh %140 : vector<8x16xf32>
    %cst_47 = arith.constant 1.000000e+00 : f32
    %142 = vector.broadcast %cst_47 : f32 to vector<8x16xf32>
    %143 = arith.subf %142, %136 : vector<8x16xf32>
    %144 = arith.mulf %143, %141 : vector<8x16xf32>
    %145 = arith.mulf %136, %102 : vector<8x16xf32>
    %146 = arith.addf %144, %145 : vector<8x16xf32>
    %147 = arith.mulf %146, %3 : vector<8x16xf32>
    %c0_48 = arith.constant 0 : index
    %c0_49 = arith.constant 0 : index
    %c0_50 = arith.constant 0 : index
    %148 = vector.load %arg11[%c0_48, %c0_49, %c0_50] : memref<1x8x16xf32, #tpu.memory_space<vmem>>, vector<1x8x16xf32>
    %149 = vector.shape_cast %148 : vector<1x8x16xf32> to vector<8x16xf32>
    %150 = vector.shape_cast %147 : vector<8x16xf32> to vector<1x8x16xf32>
    tpu.vector_store %arg11[%c0_48, %c0_49, %c0_50], %150 {strides = array<i32>} : memref<1x8x16xf32, #tpu.memory_space<vmem>>, vector<1x8x16xf32>,
    return
  }
  func.func @transform_0(%arg0: i32) -> (i32, i32, i32) {
    %c0_i32 = arith.constant 0 : i32
    %c0_i32_0 = arith.constant 0 : i32
    %c0_i32_1 = arith.constant 0 : i32
    return %arg0, %c0_i32, %c0_i32_0 : i32, i32, i32
  }
  func.func @transform_1(%arg0: i32) -> (i32, i32, i32) {
    %c0_i32 = arith.constant 0 : i32
    %c0_i32_0 = arith.constant 0 : i32
    %c0_i32_1 = arith.constant 0 : i32
    return %arg0, %c0_i32, %c0_i32_0 : i32, i32, i32
  }
  func.func @transform_2(%arg0: i32) -> (i32, i32, i32) {
    %c0_i32 = arith.constant 0 : i32
    %c0_i32_0 = arith.constant 0 : i32
    %c0_i32_1 = arith.constant 0 : i32
    return %arg0, %c0_i32, %c0_i32_0 : i32, i32, i32
  }
  func.func @transform_3(%arg0: i32) -> (i32, i32) {
    %c0_i32 = arith.constant 0 : i32
    %c0_i32_0 = arith.constant 0 : i32
    %c0_i32_1 = arith.constant 0 : i32
    return %c0_i32, %c0_i32_0 : i32, i32
  }
  func.func @transform_4(%arg0: i32) -> (i32, i32) {
    %c0_i32 = arith.constant 0 : i32
    %c0_i32_0 = arith.constant 0 : i32
    %c0_i32_1 = arith.constant 0 : i32
    return %c0_i32, %c0_i32_0 : i32, i32
  }
  func.func @transform_5(%arg0: i32) -> (i32, i32) {
    %c0_i32 = arith.constant 0 : i32
    %c0_i32_0 = arith.constant 0 : i32
    %c0_i32_1 = arith.constant 0 : i32
    return %c0_i32, %c0_i32_0 : i32, i32
  }
  func.func @transform_6(%arg0: i32) -> (i32, i32) {
    %c0_i32 = arith.constant 0 : i32
    %c0_i32_0 = arith.constant 0 : i32
    %c0_i32_1 = arith.constant 0 : i32
    return %c0_i32, %c0_i32_0 : i32, i32
  }
  func.func @transform_7(%arg0: i32) -> (i32, i32) {
    %c0_i32 = arith.constant 0 : i32
    %c0_i32_0 = arith.constant 0 : i32
    %c0_i32_1 = arith.constant 0 : i32
    return %c0_i32, %c0_i32_0 : i32, i32
  }
  func.func @transform_8(%arg0: i32) -> (i32, i32) {
    %c0_i32 = arith.constant 0 : i32
    %c0_i32_0 = arith.constant 0 : i32
    %c0_i32_1 = arith.constant 0 : i32
    return %c0_i32, %c0_i32_0 : i32, i32
  }
  func.func @transform_9(%arg0: i32) -> (i32, i32) {
    %c0_i32 = arith.constant 0 : i32
    %c0_i32_0 = arith.constant 0 : i32
    %c0_i32_1 = arith.constant 0 : i32
    return %c0_i32, %c0_i32_0 : i32, i32
  }
  func.func @transform_10(%arg0: i32) -> (i32, i32, i32) {
    %c0_i32 = arith.constant 0 : i32
    %c0_i32_0 = arith.constant 0 : i32
    %c0_i32_1 = arith.constant 0 : i32
    return %arg0, %c0_i32, %c0_i32_0 : i32, i32, i32
  }
}

</mosaic_0001>

<bundles_post_ra>
// kernel: tpu_custom_call.1
= control target key start
LH: loop header
LB: loop body
LE: loop exit
PB: predicated region body
PF: predicated region fallthrough
CT: control target
= control target key end

     0   :  { %15 = vsyncpa [#allocation3], 0  ;;  %s2810_s0 = inlined_call_operand.hbm [shape: bf16[2,128,128], index: 0, kind: input, shape index: {}]   ;;  %s2811_s1 = inlined_call_operand.vmem [shape: f32[2,8,16], index: 1, kind: input, shape index: {}]   ;;  %s2812_s2 = inlined_call_operand.vmem [shape: f32[2,8,16], index: 2, kind: input, shape index: {}]   ;;  %s2813_s3 = inlined_call_operand.vmem [shape: f32[8,128], index: 3, kind: input, shape index: {}]   ;;  %s2814_s4 = inlined_call_operand.hbm [shape: bf16[16,128], index: 4, kind: input, shape index: {}]   ;;  %s2815_s5 = inlined_call_operand.vmem [shape: bf16[128,16], index: 5, kind: input, shape index: {}]   ;;  %s2816_s6 = inlined_call_operand.vmem [shape: f32[16,48], index: 6, kind: input, shape index: {}]   ;;  %s2817_s7 = inlined_call_operand.vmem [shape: f32[16,48], index: 7, kind: input, shape index: {}]   ;;  %s2818_s8 = inlined_call_operand.vmem [shape: f32[1,48], index: 8, kind: input, shape index: {}]   ;;  %s2819_s9 = inlined_call_operand.vmem [shape: f32[1,48], index: 9, kind: input, shape index: {}]   ;;  %s2820_s10 = inlined_call_operand.hbm [shape: f32[2,8,16], index: 10, kind: output, shape index: {}]  }
   0x1   :  { %17 = vsyncpa [#allocation3 + $0x1], 0 }
   0x2   :  { %18 = vsyncpa [#allocation6], 0 }
   0x3   :  { %19 = vsyncpa [#allocation4], 0 }
   0x4   :  { %21 = vsyncpa [#allocation4 + $0x1], 0  ;;  %s2282_s13 = smov 0   ;;  %s2284_s14 = smov 0  }
   0x5   :  { %s2286_s15 = smov 0   ;;  %s2288_s16 = smov 0  }
   0x6 LB: > { %2829 = sst [smem:[#allocation11_spill]] %s2201_s13  ;;  %s2303_s17 = sadd.s32 4294967295, %s2213_s16   ;;  %s2213_s16 = sphi %s2288_s16, %s2848_s16   ;;  %s2209_s15 = sphi %s2286_s15, %s2851_s15   ;;  %s2205_s14 = sphi %s2284_s14, %s2850_s14   ;;  %s2201_s13 = sphi %s2282_s13, %s2849_s13  }
   0x7   : > { %s1659_s18 = sadd.s32 4294967294, %s2213_s16   ;;  %p47_p0 = scmp.ne.s32.totalorder %s2205_s14, %s2201_s13 }
   0x8   : > { %p2823_p1 = scmp.eq.s32.totalorder %s2303_s17, 0  ;;  %p276_p3 = scmp.eq.s32.totalorder %s1659_s18, 1 }
   0x9   : > { %p1660_p5 = scmp.ge.s32.totalorder %s2213_s16, 1  ;;  %p283_p7 = scmp.lt.s32.totalorder %s2213_s16, 3 }
   0xa   : > { %p2312_p4 = por %p2823_p1, %p47_p0  ;;  %p2317_p6 = por %p276_p3, %p47_p0 }
   0xb   : > { %p2322_p8 = pnand %p1660_p5, %p283_p7  ;;  %s2215_s22 = smov [#allocation5]  }
   0xc   : > { %s2830_s19 = scalar_select %p2312_p4, 1, 0 }
   0xd   : > { %s2831_s20 = scalar_select %p2317_p6, 1, 0 }
   0xe   : > { %s2833_s21 = scalar_select %p2322_p8, 1, 0 }
   0xf   : > { %2832 = sst [smem:[#allocation12_spill]] %s2831_s20  ;;  %s298_s23 = sshll.u32 %s2215_s22, 4  ;;  %s2326_s23 = int_to_ptr.vmem [resolvable:$true] %s298_s23 }
  0x10   : > { %p1992_p9 = pneg %p2322_p8  ;;  %s2338_s25 = sadd.s32 1, %s2213_s16  }
  0x11   : > { %2835 = sst [smem:[#allocation13_spill]] %s2338_s25  ;;  %s34_s26 = sadd.s32 1, %s2209_s15 }
  0x12   : > { %p2333_p11 = pnand %p1992_p9, %p2823_p1  ;;  %s31_s27 = ssub.s32 %s2213_s16, %s2338_s25 }
  0x13   : > { %s2085_s30 = scalar_lea.hbm %s2814_s4, 128 }
  0x14   : > { %p2086_p12 = scmp.ne.s32.totalorder %s2814_s4, %s2085_s30  ;;  %p2087_p13 = pneg %p2333_p11 }
  0x15   : > { %p2092_p5 = scmp.lt.u32.totalorder %s2085_s30, %s2814_s4 }
  0x16   : > { %p2088_p0 = pnand %p2087_p13, %p2086_p12 }
  0x18   : > { %p2089_p3 = pneg %p2088_p0 }
  0x1a   : > { %p2094_p7 = pnand %p2092_p5, %p2089_p3 }
  0x1c   : > { %2097 = shalt.err (!%p2094_p7)
}
  0x1d   : > { %s2098_s25 = scalar_lea.vmem %s2326_s23, 128  ;;  %p2106_p2 = scmp.lt.s32.totalorder %s2326_s23, %s2326_s23 }
  0x1e   : > { %p2099_p9 = scmp.ne.s32.totalorder %s2326_s23, %s2098_s25  ;;  %p2107_p6 = scmp.lt.s32.totalorder %s2098_s25, %s2098_s25 }
  0x20   : > { %p2101_p10 = pnand %p2099_p9, %p2087_p13  ;;  %p2108_p4 = por %p2107_p6, %p2106_p2 }
  0x22   : > { %p2102_p1 = pneg %p2101_p10 }
  0x24   : > { %p2109_p8 = pnand %p2108_p4, %p2102_p1 }
  0x26   : > { %2112 = shalt.err (!%p2109_p8)
}
  0x27   : > { %s2828_s28 = smov 64   ;;  %s2217_s29 = smov 4  }
  0x28   : > { %1995 = dma.hbm_to_vmem [thread:$0]  (!%p2333_p11), %s2814_s4, 128, %s2326_s23, [#allocation6], %s2828_s28, %s2828_s28, %s2217_s29  }
  0x29   : > { %p32_p1 = scmp.eq.s32.totalorder %s31_s27, 0  ;;  %p41_p2 = scmp.ne.s32.totalorder %s2209_s15, %s2205_s14 }
  0x2a   : > { %p42_p4 = scmp.eq.s32.totalorder %s2213_s16, 0  ;;  %p2005_p6 = scmp.lt.s32.totalorder %s2213_s16, 2 }
  0x2b   : > { %s2372_s11 = scalar_select %p32_p1, %s2209_s15, %s34_s26  }
  0x2c   : > { %p43_p8 = por %p42_p4, %p41_p2  ;;  %p2836_p10 = scmp.eq.s32.totalorder %s2303_s17, 1 }
  0x2d   : > { %s327_s24 = sand.u32 1, %s2209_s15   ;;  %s1707_s18 = sshll.u32 %s2213_s16, 10 }
  0x2e   : > { %p2376_p12 = por %p2836_p10, %p41_p2  ;;  %s1663_s22 = sshll.u32 %s327_s24, 6 }
  0x2f   : > { %s2385_s25 = scalar_lea.hbm %s2810_s0, %s1707_s18  ;;  %s331_s23 = scalar_lea.vmem [#allocation2], %s1663_s22 }
  0x30   : > { %s338_s26 = sshll.u32 %s331_s23, 4  ;;  %p2387_p11 = pnand %p2005_p6, %p43_p8  ;;  %s2391_s26 = int_to_ptr.vmem [resolvable:$true] %s338_s26 }
  0x31   : > { %s2393_s30 = scalar_lea.sflag [#allocation3], %s327_s24  ;;  %s2113_s28 = scalar_lea.hbm %s2385_s25, 1024 }
  0x32   : > { %p2114_p13 = scmp.ne.s32.totalorder %s2385_s25, %s2113_s28  ;;  %p2115_p0 = pneg %p2387_p11 }
  0x33   : > { %s2118_s18 = scalar_lea.hbm %s2810_s0, 2048  ;;  %p2119_p7 = scmp.lt.u32.totalorder %s2385_s25, %s2810_s0 }
  0x34   : > { %p2116_p3 = pnand %p2115_p0, %p2114_p13  ;;  %p2120_p9 = scmp.lt.u32.totalorder %s2118_s18, %s2113_s28 }
  0x35   : > { %p2122_p2 = scmp.lt.u32.totalorder %s2113_s28, %s2385_s25 }
  0x36   : > { %p2117_p5 = pneg %p2116_p3  ;;  %p2121_p1 = por %p2120_p9, %p2119_p7 }
  0x38   : > { %p2123_p4 = por %p2122_p2, %p2121_p1 }
  0x3a   : > { %p2124_p6 = pnand %p2123_p4, %p2117_p5 }
  0x3c   : > { %2127 = shalt.err (!%p2124_p6)
}
  0x3d   : > { %s2128_s24 = scalar_lea.vmem %s2391_s26, 1024  ;;  %s2218_s13 = smov [#allocation2]  }
  0x3e   : > { %p2129_p8 = scmp.ne.s32.totalorder %s2391_s26, %s2128_s24  ;;  %s2133_s20 = sshll.u32 %s2218_s13, 4  ;;  %s2134_s20 = int_to_ptr.vmem [resolvable:$false] %s2133_s20 }
  0x3f   : > { %s2135_s22 = scalar_lea.vmem %s2134_s20, 2048  ;;  %p2136_p3 = scmp.lt.s32.totalorder %s2391_s26, %s2134_s20 }
  0x40   : > { %p2131_p10 = pnand %p2129_p8, %p2115_p0  ;;  %p2137_p7 = scmp.lt.s32.totalorder %s2135_s22, %s2128_s24 }
  0x42   : > { %p2132_p13 = pneg %p2131_p10  ;;  %p2138_p9 = por %p2137_p7, %p2136_p3 }
  0x44   : > { %p2139_p1 = pnand %p2138_p9, %p2132_p13 }
  0x46   : > { %2142 = shalt.err (!%p2139_p1)
}
  0x47   : > { %s2839_s28 = smov 64   ;;  %p2840_p0 = scmp.ne.s32.totalorder %s2833_s21, 0 }
  0x48   : > { %1999 = dma.hbm_to_vmem [thread:$0]  (!%p2387_p11), %s2385_s25, 1024, %s2391_s26, %s2393_s30, %s2839_s28, %s2839_s28, %s2217_s29  }
  0x49   : > { %364 = sbr.rel (%p2840_p0) target bundleno = 3913 (0xf49), region = 60  ;;  %s2427_s18 = sand.u32 (!%p2840_p0), 1, %s2205_s14  }
  0x4a   : > { %s1667_s23 = sshll.u32 (!%p2840_p0), %s2427_s18, 6  ;;  %s367_s24 = scalar_lea.sflag (!%p2840_p0), [#allocation3], %s2427_s18 }
  0x4b   : > { %s2431_s13 = scalar_lea.vmem (!%p2840_p0), [#allocation2], %s1667_s23  ;;  %p2841_p5 = scmp.ne.s32.totalorder (!%p2840_p0), %s2830_s19, 0 }
  0x50   : > { %2188 = dma.done.wait (%p2841_p5), %s367_s24, 1024  }
  0x51   : > { %2190 = vsyncadd (%p2841_p5), %s367_s24, 4294966272  ;;  %p2842_p11 = scmp.eq.s32.totalorder %s2303_s17, 0 }
  0x53   : > { %2192 = dma.done.wait (%p2842_p11), [#allocation6], 128   ;;  %p2843_p2 = pmov %p2842_p11 }
  0x54   : > { %p419_p4 = scmp.lt.s32.totalorder %s2303_s17, 1  ;;  %v2219_v0 = vmov 0.0   ;;  %vm2220_vm0 = vmmov 0   ;;  %v2457_v1 = vld [vmem:[#allocation5] sm:$0xff]   ;;  %vm478_vm1 = vcmask 130048   ;;  %v2470_v5 = vld [vmem:[%s2431_s13 + $0x8] sm:$0xff]   ;;  %v618_v37 = vlaneseq }
  0x55   : > { %2194 = vsyncadd (%p2843_p2), [#allocation6], 4294967168  ;;  %1786 = vmatprep.subr.bf16.mxu0 %v2219_v0  ;;  %1788 = vmatprep.mubr.msk.bf16.mxu0 %vm2220_vm0, %v2219_v0  ;;  %v2465_v4 = vld [vmem:[%s2431_s13] sm:$0xff]   ;;  %v2475_v6 = vld [vmem:[%s2431_s13 + $0x10] sm:$0xff]   ;;  %v2221_v33 = vmov 0.0|0.0   ;;  %s2222_s24 = smov 96  }
  0x56   : > { %s2446_s19 = scalar_select %p419_p4, %s2303_s17, 1  ;;  %1792 = vmatprep.subr.bf16.mxu1 %v2219_v0  ;;  %1808 = vmatprep.mubr.msk.bf16.mxu1 %vm2220_vm0, %v2219_v0  ;;  %v2482_v7 = vld [vmem:[%s2431_s13 + $0x18] sm:$0xff]   ;;  %v2489_v8 = vld [vmem:[%s2431_s13 + $0x20] sm:$0xff]   ;;  %v2494_v9 = vld [vmem:[%s2431_s13 + $0x28] sm:$0xff]   ;;  %v619_v38 = vshrl.u32 %v618_v37, 7 }
  0x57   : > { %1787 = vmatpush3.bf16.msra.mxu0 %v2457_v1  ;;  %1793 = vmatpush3.bf16.msra.mxu1 %v2465_v4  ;;  %v2499_v10 = vld [vmem:[%s2431_s13 + $0x30] sm:$0xff]   ;;  %v2503_v11 = vld [vmem:[%s2431_s13 + $0x38] sm:$0xff]   ;;  %v2510_v12 = vld [vmem:[%s2815_s5] sm:$0xff]   ;;  %s2223_s25 = smov 32   ;;  %s2224_s20 = smov 16  }
  0x58   : > { %s1670_s21 = sshll.u32 %s2446_s19, 3  ;;  %1812 = vmatprep.subr.bf16.mxu0 %v2219_v0  ;;  %1794 = vmatprep.subr.bf16.mxu1 %v2219_v0  ;;  %v2516_v13 = vld [vmem:[%s2815_s5 + $0x8] sm:$0xff]   ;;  %v2523_v14 = vld [vmem:[%s2815_s5 + $0x10] sm:$0xff]   ;;  %v2530_v15 = vld [vmem:[%s2815_s5 + $0x18] sm:$0xff]   ;;  %v2582_v39 = vsub.s32 0, %v619_v38  ;;  %s2225_s22 = smov 112  }
  0x59   : > { %s422_s26 = scalar_lea.vmem %s2811_s1, %s1670_s21  ;;  %v2537_v16 = vld [vmem:[%s2815_s5 + $0x20] sm:$0xff]   ;;  %v2544_v17 = vld [vmem:[%s2815_s5 + $0x28] sm:$0xff]   ;;  %v2560_v31 = vld [vmem:[%s2815_s5 + $0x30] sm:$0xff]   ;;  %s426_s30 = scalar_lea.vmem %s2812_s2, %s1670_s21 }
  0x5a   : > { %v2459_v2 = vld [vmem:[%s422_s26] sm:$0xff]  ;;  %v2567_v32 = vld [vmem:[%s2815_s5 + $0x38] sm:$0xff]   ;;  %v466_v35 = vld [vmem:[%s2816_s6 + $0x8] sm:$0xff]  ;;  %s1669_s19 = sshll.u32 %s2427_s18, 3  ;;  %s1704_s21 = sshll.u32 %s2303_s17, 7 }
  0x5b   : > { %v471_v3 = vpack.c.bf16 %v2459_v2, %v2459_v2  ;;  %1795 = vmatpush3.bf16.msra.mxu1 %v2470_v5  ;;  %v2552_v18 = vld [vmem:[%s2813_s3] sm:$0xff]  ;;  %v468_v44 = vld [vmem:[%s2817_s7 + $0x8] sm:$0xff]  ;;  %s418_s28 = scalar_lea.vmem [#allocation7], %s1669_s19  ;;  %s2765_s29 = scalar_lea.hbm %s2820_s10, %s1704_s21 }
  0x5c   : > { %1796 = vmatprep.subr.bf16.mxu1 %v2219_v0  ;;  %v465_v34 = vld [vmem:[%s2816_s6] sm:$0xff]  ;;  %s1555_s23 = sshll.u32 %s418_s28, 4  ;;  %s2226_s17 = smov [#allocation7]   ;;  %s2767_s23 = int_to_ptr.vmem [resolvable:$true] %s1555_s23 }
  0x5d   : > { %1789 = vmatmul.mubr.msk.bf16.vlgmr.msra.gmra.mrb[0].mxu0 %vm478_vm1, %v471_v3  ;;  %v2578_v36 = vpack.c.bf16 %v466_v35, %v465_v34  ;;  %v467_v43 = vld [vmem:[%s2817_s7] sm:$0xff]  ;;  %s2143_s26 = scalar_lea.vmem %s2767_s23, 128  ;;  %s2147_s27 = sshll.u32 %s2226_s17, 4  ;;  %s2148_s27 = int_to_ptr.vmem [resolvable:$false] %s2147_s27 }
  0x5e   : > { %1828 = vmatprep.mubr.msk.bf16.mxu0 %vm2220_vm0, %v2219_v0  ;;  %1813 = vmatpush3.bf16.msra.mxu0 %v2510_v12  ;;  %v2592_v48 = vpack.c.bf16 %v468_v44, %v467_v43  ;;  %v2626_v54 = vld [vmem:[%s2819_s9] ss:$0 sm:$0xff]  ;;  %p2144_p6 = scmp.ne.s32.totalorder %s2767_s23, %s2143_s26  ;;  %p2150_p13 = scmp.lt.s32.totalorder %s2767_s23, %s2148_s27 }
  0x5f   : > { %1797 = vmatpush3.bf16.msra.mxu1 %v2475_v6  ;;  %1814 = vmatprep.subr.bf16.mxu0 %v2219_v0  ;;  %v2633_v58 = vld [vmem:[%s2818_s8] ss:$0 sm:$0xff] }
  0x60   : > { %1798 = vmatprep.subr.bf16.mxu1 %v2219_v0  ;;  %p2145_p8 = pnand %p2144_p6, %p2376_p12 }
  0x62   : > { %1815 = vmatpush3.bf16.msra.mxu0 %v2516_v13  ;;  %p2146_p10 = pneg %p2145_p8 }
  0x63   : > { %1799 = vmatpush3.bf16.msra.mxu1 %v2482_v7  ;;  %1816 = vmatprep.subr.bf16.mxu0 %v2219_v0 }
  0x64   : > { %1800 = vmatprep.subr.bf16.mxu1 %v2219_v0 }
  0x66   : > { %1817 = vmatpush3.bf16.msra.mxu0 %v2523_v14 }
  0x67   : > { %1801 = vmatpush3.bf16.msra.mxu1 %v2489_v8  ;;  %1818 = vmatprep.subr.bf16.mxu0 %v2219_v0 }
  0x68   : > { %1802 = vmatprep.subr.bf16.mxu1 %v2219_v0 }
  0x6a   : > { %1819 = vmatpush3.bf16.msra.mxu0 %v2530_v15 }
  0x6b   : > { %1803 = vmatpush3.bf16.msra.mxu1 %v2494_v9  ;;  %1820 = vmatprep.subr.bf16.mxu0 %v2219_v0 }
  0x6c   : > { %1804 = vmatprep.subr.bf16.mxu1 %v2219_v0 }
  0x6e   : > { %1821 = vmatpush3.bf16.msra.mxu0 %v2537_v16 }
  0x6f   : > { %1805 = vmatpush3.bf16.msra.mxu1 %v2499_v10  ;;  %1822 = vmatprep.subr.bf16.mxu0 %v2219_v0 }
  0x70   : > { %1806 = vmatprep.subr.bf16.mxu1 %v2219_v0 }
  0x72   : > { %1823 = vmatpush3.bf16.msra.mxu0 %v2544_v17 }
  0x73   : > { %1807 = vmatpush3.bf16.msra.mxu1 %v2503_v11  ;;  %1824 = vmatprep.subr.bf16.mxu0 %v2219_v0 }
  0x74   : > { %1966 = vmatprep.subr.bf16.mxu1 %v2221_v33 }
  0x76   : > { %1825 = vmatpush3.bf16.msra.mxu0 %v2560_v31 }
  0x77   : > { %1826 = vmatprep.subr.bf16.mxu0 %v2219_v0 }
  0x7a   : > { %1827 = vmatpush3.bf16.msra.mxu0 %v2567_v32 }
  0x7b   : > { %1969 = vmatprep.subr.bf16.mxu0 %v2221_v33 }
 0x130   : > { %v516_v19 = vpop.f32.mrb[0].mxu0 }
 0x131   : > { %v522_v20 = vmul.f32 %v516_v19, %v2552_v18  ;;  %v1790_v21 = vpop.f32.mrb[1].mxu0 }
 0x132   : > { %v519_v22 = vpop.f32.mrb[2].mxu0 }
 0x133   : > { %v523_v23 = vrot.slane %v522_v20, 4  ;;  %v1791_v24 = vpop.f32.mrb[3].mxu0 }
 0x135   : > { %v524_v25 = vadd.f32 %v523_v23, %v522_v20  ;;  %v429_v23 = vld [vmem:[%s426_s30] sm:$0xff]  ;;  %s2149_s30 = scalar_lea.vmem %s2148_s27, 256 }
 0x136   : > { %p2151_p3 = scmp.lt.s32.totalorder %s2149_s30, %s2143_s26 }
 0x137   : > { %v525_v26 = vrot.slane %v524_v25, 2 }
 0x138   : > { %p2152_p7 = por %p2151_p3, %p2150_p13 }
 0x139   : > { %v526_v27 = vadd.f32 %v525_v26, %v524_v25 }
 0x13a   : > { %p2153_p9 = pnand %p2152_p7, %p2146_p10 }
 0x13b   : > { %v527_v28 = vrot.slane %v526_v27, 1 }
 0x13d   : > { %v528_v29 = vadd.f32 %v527_v28, %v526_v27 }
 0x13f   : > { %v529_v30 = vpack.c.bf16 %v528_v29, %v528_v29 }
 0x141   : > { %1809 = vmatmul.mubr.bf16.vlgmr.msra.gmra.mrb[0].mxu1 %v529_v30 }
 0x142   : > { %1836 = vmatprep.mubr.msk.f32.mxu1 %vm2220_vm0, %v2219_v0  ;;  %1968 = vmatpush3.bf16.msra.mxu1 %v2578_v36 }
 0x143   : > { %1846 = vmatprep.subr.bf16.mxu1 %v2219_v0 }
 0x214   : > { %v612_v40 = vpop.f32.mrb[0].mxu1 }
 0x215   : > { %v621_v41 = vrot.slane %v612_v40, %v2582_v39  ;;  %v1810_v42 = vpop.f32.mrb[1].mxu1 }
 0x216   : > { %v615_v45 = vpop.f32.mrb[2].mxu1 }
 0x217   : > { %v622_v46 = vmul.f32 %v621_v41, %v2552_v18  ;;  %v1811_v47 = vpop.f32.mrb[3].mxu1 }
 0x219   : > { %v623_v49 = vpack.c.bf16 %v622_v46, %v622_v46 }
 0x21b   : > { %1829 = vmatmul.mubr.bf16.vlgmr.msra.gmra.mrb[4].mxu0 %v623_v49 }
 0x21c   : > { %1971 = vmatpush3.bf16.msra.mxu0 %v2592_v48  ;;  %1843 = vmatprep.mubr.msk.f32.mxu0 %vm2220_vm0, %v2219_v0 }
 0x21d   : > { %1852 = vmatprep.subr.bf16.mxu0 %v2219_v0 }
 0x223   : > { %1844 = vmatmul.mubr.msk.f32.vlgmr.msra.gmra.mrb[8].mxu0 %vm478_vm1, %v2459_v2 }
 0x224   : > { %1853 = vmatpush3.bf16.msra.mxu0 %v2465_v4  ;;  %1868 = vmatprep.mubr.msk.bf16.mxu0 %vm2220_vm0, %v2219_v0 }
 0x225   : > { %1854 = vmatprep.subr.bf16.mxu0 %v2219_v0 }
 0x228   : > { %1855 = vmatpush3.bf16.msra.mxu0 %v2470_v5 }
 0x229   : > { %1856 = vmatprep.subr.bf16.mxu0 %v2219_v0 }
 0x22c   : > { %1857 = vmatpush3.bf16.msra.mxu0 %v2475_v6 }
 0x22d   : > { %1858 = vmatprep.subr.bf16.mxu0 %v2219_v0 }
 0x230   : > { %1859 = vmatpush3.bf16.msra.mxu0 %v2482_v7 }
 0x231   : > { %1860 = vmatprep.subr.bf16.mxu0 %v2219_v0 }
 0x234   : > { %1861 = vmatpush3.bf16.msra.mxu0 %v2489_v8 }
 0x235   : > { %1862 = vmatprep.subr.bf16.mxu0 %v2219_v0 }
 0x238   : > { %1863 = vmatpush3.bf16.msra.mxu0 %v2494_v9 }
 0x239   : > { %1864 = vmatprep.subr.bf16.mxu0 %v2219_v0 }
 0x23c   : > { %1865 = vmatpush3.bf16.msra.mxu0 %v2499_v10 }
 0x23d   : > { %1866 = vmatprep.subr.bf16.mxu0 %v2219_v0 }
 0x240   : > { %1867 = vmatpush3.bf16.msra.mxu0 %v2503_v11 }
 0x241   : > { %1972 = vmatprep.subr.bf16.mxu0 %v2221_v33 }
 0x2ee   : > { %v706_v50 = vpop.f32.mrb[4].mxu0 }
 0x2ef   : > { %v1830_v51 = vpop.f32.mrb[5].mxu0  ;;  %1837 = vmatmul.mubr.msk.f32.vlgmr.msra.gmra.mrb[4].mxu1 %vm478_vm1, %v706_v50 }
 0x2f0   : > { %v709_v52 = vpop.f32.mrb[6].mxu0  ;;  %1847 = vmatpush3.bf16.msra.mxu1 %v2457_v1  ;;  %1848 = vmatprep.mubr.msk.bf16.mxu1 %vm2220_vm0, %v2219_v0 }
 0x2f1   : > { %v1831_v53 = vpop.f32.mrb[7].mxu0  ;;  %1872 = vmatprep.subr.bf16.mxu1 %v2219_v0 }
 0x2f6   : > { %v866_v55 = vpop.f32.mrb[8].mxu0 }
 0x2f7   : > { %v867_v56 = vadd.f32 %v2626_v54, %v866_v55  ;;  %v1845_v57 = vpop.f32.mrb[9].mxu0 }
 0x2f9   : > { %878 = vrot.lane.b32.xlu0 %v867_v56, %s2222_s24 }
 0x36b   : > { %v879_v20 = vpop.permute.xlu0 %878 }
 0x3c2   : > { %v787_v59 = vpop.f32.mrb[4].mxu1 }
 0x3c3   : > { %v788_v60 = vadd.f32 %v2633_v58, %v787_v59  ;;  %v1838_v61 = vpop.f32.mrb[5].mxu1 }
 0x3c5   : > { %v870_v62 = vadd.f32 %v867_v56, %v788_v60 }
 0x3c7   : > { %v1694_v63 = vmul.f32 -1.442695, %v870_v62 }
 0x3c9   : > { %2067 = vpow2.f32 %v1694_v63 }
 0x3d3   : > { %v2068_v3 = vpop.eup %2067 }
 0x3d4   : > { %v874_v19 = vadd.f32 1.0, %v2068_v3 }
 0x3d6   : > { %2069 = vrcp.f32 %v874_v19 }
 0x3e0   : > { %v2070_v21 = vpop.eup %2069 }
 0x3e1   : > { %v881_v22 = vmul.f32 %v2070_v21, %v879_v20  ;;  %v888_v28 = vsub.f32 1.0, %v2070_v21 }
 0x3e3   : > { %883 = vrot.lane.b32.xlu0 %v881_v22, %s2223_s25 }
 0x3e7   : > { %900 = vrot.lane.b32.xlu0 %v429_v23, %s2224_s20 }
 0x455   : > { %v884_v24 = vpop.permute.xlu0 %883 }
 0x456   : > { %v886_v25 = vadd.f32 %v884_v24, %v788_v60 }
 0x458   : > { %2071 = vtanh.f32 %v886_v25 }
 0x459   : > { %v2644_v35 = vpop.permute.xlu0 %900 }
 0x462   : > { %v2072_v26 = vpop.eup %2071 }
 0x463   : > { %890 = vrot.lane.b32.xlu1 %v2072_v26, %s2225_s22 }
 0x467   : > { %894 = vrot.lane.b32.xlu1 %v2459_v2, %s2224_s20 }
 0x4d5   : > { %v891_v27 = vpop.permute.xlu1 %890 }
 0x4d6   : > { %v893_v30 = vmul.f32 %v891_v27, %v888_v28 }
 0x4d9   : > { %v895_v29 = vpop.permute.xlu1 %894 }
 0x4da   : > { %v897_v34 = vmul.f32 %v2070_v21, %v895_v29 }
 0x4dc   : > { %v898_v37 = vadd.f32 %v897_v34, %v893_v30 }
 0x4de   : > { %v2647_v38 = vmul.f32 %v2644_v35, %v898_v37 }
 0x4e0   : > { %1119 = vrot.lane.b32.xlu0 %v2647_v38, %s2225_s22  ;;  %v904_v40 = vpack.c.bf16 %v2647_v38, %v2647_v38 }
 0x4e2   : > { %906 = vrot.lane.b32.xlu1 %v904_v40, %s2225_s22 }
 0x552   : > { %v1120_v63 = vpop.permute.xlu0 %1119 }
 0x554   : > { %v907_v2 = vpop.permute.xlu1 %906 }
 0x555   : > { %1849 = vmatmul.mubr.msk.bf16.vlgmr.msra.gmra.mrb[8].mxu1 %vm478_vm1, %v907_v2 }
 0x556   : > { %1873 = vmatpush3.bf16.msra.mxu1 %v2510_v12  ;;  %1888 = vmatprep.mubr.msk.bf16.mxu1 %vm2220_vm0, %v2219_v0 }
 0x557   : > { %1874 = vmatprep.subr.bf16.mxu1 %v2219_v0 }
 0x55a   : > { %1875 = vmatpush3.bf16.msra.mxu1 %v2516_v13 }
 0x55b   : > { %1876 = vmatprep.subr.bf16.mxu1 %v2219_v0 }
 0x55e   : > { %1877 = vmatpush3.bf16.msra.mxu1 %v2523_v14 }
 0x55f   : > { %1878 = vmatprep.subr.bf16.mxu1 %v2219_v0 }
 0x562   : > { %1879 = vmatpush3.bf16.msra.mxu1 %v2530_v15 }
 0x563   : > { %1880 = vmatprep.subr.bf16.mxu1 %v2219_v0 }
 0x566   : > { %1881 = vmatpush3.bf16.msra.mxu1 %v2537_v16 }
 0x567   : > { %1882 = vmatprep.subr.bf16.mxu1 %v2219_v0 }
 0x56a   : > { %1883 = vmatpush3.bf16.msra.mxu1 %v2544_v17 }
 0x56b   : > { %1884 = vmatprep.subr.bf16.mxu1 %v2219_v0 }
 0x56e   : > { %1885 = vmatpush3.bf16.msra.mxu1 %v2560_v31 }
 0x56f   : > { %1886 = vmatprep.subr.bf16.mxu1 %v2219_v0 }
 0x572   : > { %1887 = vmatpush3.bf16.msra.mxu1 %v2567_v32 }
 0x573   : > { %1975 = vmatprep.subr.bf16.mxu1 %v2221_v33 }
 0x628   : > { %v945_v41 = vpop.f32.mrb[8].mxu1 }
 0x629   : > { %v951_v42 = vmul.f32 %v945_v41, %v2552_v18  ;;  %v1850_v43 = vpop.f32.mrb[9].mxu1 }
 0x62a   : > { %v948_v44 = vpop.f32.mrb[10].mxu1 }
 0x62b   : > { %v952_v45 = vrot.slane %v951_v42, 4  ;;  %v1851_v46 = vpop.f32.mrb[11].mxu1 }
 0x62d   : > { %v953_v47 = vadd.f32 %v952_v45, %v951_v42 }
 0x62f   : > { %v954_v49 = vrot.slane %v953_v47, 2 }
 0x631   : > { %v955_v50 = vadd.f32 %v954_v49, %v953_v47 }
 0x633   : > { %v956_v51 = vrot.slane %v955_v50, 1 }
 0x635   : > { %v957_v52 = vadd.f32 %v956_v51, %v955_v50 }
 0x637   : > { %v958_v53 = vpack.c.bf16 %v957_v52, %v957_v52 }
 0x639   : > { %1869 = vmatmul.mubr.bf16.vlgmr.msra.gmra.mrb[12].mxu0 %v958_v53 }
 0x63a   : > { %1974 = vmatpush3.bf16.msra.mxu0 %v2578_v36  ;;  %1896 = vmatprep.mubr.msk.f32.mxu0 %vm2220_vm0, %v2219_v0 }
 0x63b   : > { %1906 = vmatprep.subr.bf16.mxu0 %v2219_v0 }
 0x70c   : > { %v993_v55 = vpop.f32.mrb[12].mxu0 }
 0x70d   : > { %v1002_v56 = vrot.slane %v993_v55, %v2582_v39  ;;  %v1870_v57 = vpop.f32.mrb[13].mxu0 }
 0x70e   : > { %v996_v59 = vpop.f32.mrb[14].mxu0 }
 0x70f   : > { %v1003_v60 = vmul.f32 %v1002_v56, %v2552_v18  ;;  %v1871_v61 = vpop.f32.mrb[15].mxu0 }
 0x711   : > { %v1004_v62 = vpack.c.bf16 %v1003_v60, %v1003_v60 }
 0x713   : > { %1889 = vmatmul.mubr.bf16.vlgmr.msra.gmra.mrb[12].mxu1 %v1004_v62 }
 0x714   : > { %1977 = vmatpush3.bf16.msra.mxu1 %v2592_v48  ;;  %1903 = vmatprep.mubr.msk.f32.mxu1 %vm2220_vm0, %v2219_v0 }
 0x715   : > { %1912 = vmatprep.subr.bf16.mxu1 %v2219_v0 }
 0x71b   : > { %1904 = vmatmul.mubr.msk.f32.vlgmr.msra.gmra.mrb[6].mxu1 %vm478_vm1, %v1120_v63 }
 0x71c   : > { %1913 = vmatpush3.bf16.msra.mxu1 %v2465_v4  ;;  %1928 = vmatprep.mubr.msk.bf16.mxu1 %vm2220_vm0, %v2219_v0 }
 0x71d   : > { %1914 = vmatprep.subr.bf16.mxu1 %v2219_v0 }
 0x720   : > { %1915 = vmatpush3.bf16.msra.mxu1 %v2470_v5 }
 0x721   : > { %1916 = vmatprep.subr.bf16.mxu1 %v2219_v0 }
 0x724   : > { %1917 = vmatpush3.bf16.msra.mxu1 %v2475_v6 }
 0x725   : > { %1918 = vmatprep.subr.bf16.mxu1 %v2219_v0 }
 0x728   : > { %1919 = vmatpush3.bf16.msra.mxu1 %v2482_v7 }
 0x729   : > { %1920 = vmatprep.subr.bf16.mxu1 %v2219_v0 }
 0x72c   : > { %1921 = vmatpush3.bf16.msra.mxu1 %v2489_v8 }
 0x72d   : > { %1922 = vmatprep.subr.bf16.mxu1 %v2219_v0 }
 0x730   : > { %1923 = vmatpush3.bf16.msra.mxu1 %v2494_v9 }
 0x731   : > { %1924 = vmatprep.subr.bf16.mxu1 %v2219_v0 }
 0x734   : > { %1925 = vmatpush3.bf16.msra.mxu1 %v2499_v10 }
 0x735   : > { %1926 = vmatprep.subr.bf16.mxu1 %v2219_v0 }
 0x738   : > { %1927 = vmatpush3.bf16.msra.mxu1 %v2503_v11 }
 0x739   : > { %1978 = vmatprep.subr.bf16.mxu1 %v2221_v33 }
 0x7e6   : > { %v1039_v4 = vpop.f32.mrb[12].mxu1 }
 0x7e7   : > { %v1890_v5 = vpop.f32.mrb[13].mxu1  ;;  %1897 = vmatmul.mubr.msk.f32.vlgmr.msra.gmra.mrb[10].mxu0 %vm478_vm1, %v1039_v4 }
 0x7e8   : > { %v1042_v6 = vpop.f32.mrb[14].mxu1  ;;  %1907 = vmatpush3.bf16.msra.mxu0 %v2457_v1  ;;  %1908 = vmatprep.mubr.msk.bf16.mxu0 %vm2220_vm0, %v2219_v0 }
 0x7e9   : > { %v1891_v7 = vpop.f32.mrb[15].mxu1  ;;  %1932 = vmatprep.subr.bf16.mxu0 %v2219_v0 }
 0x7ee   : > { %v1189_v8 = vpop.f32.mrb[6].mxu1 }
 0x7ef   : > { %v1190_v9 = vadd.f32 %v2626_v54, %v1189_v8  ;;  %v1905_v10 = vpop.f32.mrb[7].mxu1 }
 0x7f1   : > { %1201 = vrot.lane.b32.xlu1 %v1190_v9, %s2222_s24 }
 0x863   : > { %v1202_v24 = vpop.permute.xlu1 %1201 }
 0x8ba   : > { %v1114_v11 = vpop.f32.mrb[10].mxu0 }
 0x8bb   : > { %v1115_v3 = vadd.f32 %v2633_v58, %v1114_v11  ;;  %v1898_v19 = vpop.f32.mrb[11].mxu0 }
 0x8bd   : > { %v1193_v20 = vadd.f32 %v1190_v9, %v1115_v3 }
 0x8bf   : > { %v1698_v21 = vmul.f32 -1.442695, %v1193_v20 }
 0x8c1   : > { %2073 = vpow2.f32 %v1698_v21 }
 0x8cb   : > { %v2074_v1 = vpop.eup %2073 }
 0x8cc   : > { %v1197_v22 = vadd.f32 1.0, %v2074_v1 }
 0x8ce   : > { %2075 = vrcp.f32 %v1197_v22 }
 0x8d8   : > { %v2076_v23 = vpop.eup %2075 }
 0x8d9   : > { %v1204_v25 = vmul.f32 %v2076_v23, %v1202_v24  ;;  %v1211_v29 = vsub.f32 1.0, %v2076_v23  ;;  %v1217_v34 = vmul.f32 %v2076_v23, %v2647_v38 }
 0x8db   : > { %1206 = vrot.lane.b32.xlu0 %v1204_v25, %s2223_s25 }
 0x94d   : > { %v1207_v26 = vpop.permute.xlu0 %1206 }
 0x94e   : > { %v1209_v27 = vadd.f32 %v1207_v26, %v1115_v3 }
 0x950   : > { %2077 = vtanh.f32 %v1209_v27 }
 0x95a   : > { %v2078_v28 = vpop.eup %2077 }
 0x95b   : > { %1213 = vrot.lane.b32.xlu1 %v2078_v28, %s2225_s22 }
 0x9cd   : > { %v1214_v30 = vpop.permute.xlu1 %1213 }
 0x9ce   : > { %v1216_v37 = vmul.f32 %v1214_v30, %v1211_v29 }
 0x9d0   : > { %v1218_v40 = vadd.f32 %v1217_v34, %v1216_v37 }
 0x9d2   : > { %v2715_v2 = vmul.f32 %v1218_v40, %v2644_v35 }
 0x9d4   : > { %1435 = vrot.lane.b32.xlu1 %v2715_v2, %s2225_s22  ;;  %v1220_v41 = vpack.c.bf16 %v2715_v2, %v2715_v2 }
 0x9d6   : > { %1222 = vrot.lane.b32.xlu0 %v1220_v41, %s2225_s22 }
 0xa46   : > { %v1436_v53 = vpop.permute.xlu1 %1435 }
 0xa48   : > { %v1223_v42 = vpop.permute.xlu0 %1222 }
 0xa49   : > { %1909 = vmatmul.mubr.msk.bf16.vlgmr.msra.gmra.mrb[16].mxu0 %vm478_vm1, %v1223_v42 }
 0xa4a   : > { %1933 = vmatpush3.bf16.msra.mxu0 %v2510_v12  ;;  %1948 = vmatprep.mubr.msk.bf16.mxu0 %vm2220_vm0, %v2219_v0 }
 0xa4b   : > { %1934 = vmatprep.subr.bf16.mxu0 %v2219_v0 }
 0xa4e   : > { %1935 = vmatpush3.bf16.msra.mxu0 %v2516_v13 }
 0xa4f   : > { %1936 = vmatprep.subr.bf16.mxu0 %v2219_v0 }
 0xa52   : > { %1937 = vmatpush3.bf16.msra.mxu0 %v2523_v14 }
 0xa53   : > { %1938 = vmatprep.subr.bf16.mxu0 %v2219_v0 }
 0xa56   : > { %1939 = vmatpush3.bf16.msra.mxu0 %v2530_v15 }
 0xa57   : > { %1940 = vmatprep.subr.bf16.mxu0 %v2219_v0 }
 0xa5a   : > { %1941 = vmatpush3.bf16.msra.mxu0 %v2537_v16 }
 0xa5b   : > { %1942 = vmatprep.subr.bf16.mxu0 %v2219_v0 }
 0xa5e   : > { %1943 = vmatpush3.bf16.msra.mxu0 %v2544_v17 }
 0xa5f   : > { %1944 = vmatprep.subr.bf16.mxu0 %v2219_v0 }
 0xa62   : > { %1945 = vmatpush3.bf16.msra.mxu0 %v2560_v31 }
 0xa63   : > { %1946 = vmatprep.subr.bf16.mxu0 %v2219_v0 }
 0xa66   : > { %1947 = vmatpush3.bf16.msra.mxu0 %v2567_v32 }
 0xa67   : > { %1981 = vmatprep.subr.bf16.mxu0 %v2221_v33 }
 0xb1c   : > { %v1261_v12 = vpop.f32.mrb[16].mxu0 }
 0xb1d   : > { %v1267_v13 = vmul.f32 %v1261_v12, %v2552_v18  ;;  %v1910_v14 = vpop.f32.mrb[17].mxu0 }
 0xb1e   : > { %v1264_v15 = vpop.f32.mrb[18].mxu0 }
 0xb1f   : > { %v1268_v16 = vrot.slane %v1267_v13, 4  ;;  %v1911_v38 = vpop.f32.mrb[19].mxu0 }
 0xb21   : > { %v1269_v43 = vadd.f32 %v1268_v16, %v1267_v13 }
 0xb23   : > { %v1270_v44 = vrot.slane %v1269_v43, 2 }
 0xb25   : > { %v1271_v17 = vadd.f32 %v1270_v44, %v1269_v43 }
 0xb27   : > { %v1272_v45 = vrot.slane %v1271_v17, 1 }
 0xb29   : > { %v1273_v46 = vadd.f32 %v1272_v45, %v1271_v17 }
 0xb2b   : > { %v1274_v47 = vpack.c.bf16 %v1273_v46, %v1273_v46 }
 0xb2d   : > { %1929 = vmatmul.mubr.bf16.vlgmr.msra.gmra.mrb[16].mxu1 %v1274_v47 }
 0xb2e   : > { %1980 = vmatpush3.bf16.msra.mxu1 %v2578_v36  ;;  %1956 = vmatprep.mubr.msk.f32.mxu1 %vm2220_vm0, %v2219_v0 }
 0xc00   : > { %v1309_v31 = vpop.f32.mrb[16].mxu1 }
 0xc01   : > { %v1318_v32 = vrot.slane %v1309_v31, %v2582_v39  ;;  %v1930_v33 = vpop.f32.mrb[17].mxu1 }
 0xc02   : > { %v1312_v49 = vpop.f32.mrb[18].mxu1 }
 0xc03   : > { %v1319_v50 = vmul.f32 %v1318_v32, %v2552_v18  ;;  %v1931_v51 = vpop.f32.mrb[19].mxu1 }
 0xc05   : > { %v1320_v52 = vpack.c.bf16 %v1319_v50, %v1319_v50 }
 0xc07   : > { %1949 = vmatmul.mubr.bf16.vlgmr.msra.gmra.mrb[20].mxu0 %v1320_v52 }
 0xc08   : > { %1983 = vmatpush3.bf16.msra.mxu0 %v2592_v48  ;;  %1963 = vmatprep.mubr.msk.f32.mxu0 %vm2220_vm0, %v2219_v0 }
 0xc0f   : > { %1964 = vmatmul.mubr.msk.f32.vlgmr.msra.gmra.mrb[24].mxu0 %vm478_vm1, %v1436_v53 }
 0xcda   : > { %v1355_v36 = vpop.f32.mrb[20].mxu0 }
 0xcdb   : > { %v1950_v55 = vpop.f32.mrb[21].mxu0  ;;  %1957 = vmatmul.mubr.msk.f32.vlgmr.msra.gmra.mrb[20].mxu1 %vm478_vm1, %v1355_v36 }
 0xcdc   : > { %v1358_v39 = vpop.f32.mrb[22].mxu0 }
 0xcdd   : > { %v1951_v56 = vpop.f32.mrb[23].mxu0 }
 0xce2   : > { %v1505_v57 = vpop.f32.mrb[24].mxu0 }
 0xce3   : > { %v1506_v18 = vadd.f32 %v2626_v54, %v1505_v57  ;;  %v1965_v59 = vpop.f32.mrb[25].mxu0 }
 0xce5   : > { %1517 = vrot.lane.b32.xlu0 %v1506_v18, %s2222_s24 }
 0xd57   : > { %v1518_v6 = vpop.permute.xlu0 %1517 }
 0xdae   : > { %v1430_v60 = vpop.f32.mrb[20].mxu1 }
 0xdaf   : > { %v1431_v48 = vadd.f32 %v2633_v58, %v1430_v60  ;;  %v1958_v61 = vpop.f32.mrb[21].mxu1 }
 0xdb1   : > { %v1509_v0 = vadd.f32 %v1506_v18, %v1431_v48 }
 0xdb3   : > { %v1702_v62 = vmul.f32 -1.442695, %v1509_v0 }
 0xdb5   : > { %2079 = vpow2.f32 %v1702_v62 }
 0xdbf   : > { %v2080_v63 = vpop.eup %2079 }
 0xdc0   : > { %v1513_v4 = vadd.f32 1.0, %v2080_v63 }
 0xdc2   : > { %2081 = vrcp.f32 %v1513_v4 }
 0xdcc   : > { %v2082_v5 = vpop.eup %2081 }
 0xdcd   : > { %v1520_v7 = vmul.f32 %v2082_v5, %v1518_v6  ;;  %v1527_v58 = vsub.f32 1.0, %v2082_v5  ;;  %v1533_v11 = vmul.f32 %v2082_v5, %v2715_v2 }
 0xdcf   : > { %1522 = vrot.lane.b32.xlu1 %v1520_v7, %s2223_s25  ;;  %s1542_s25 = scalar_lea.sflag [#allocation4], %s2427_s18 }
 0xe41   : > { %v1523_v54 = vpop.permute.xlu1 %1522 }
 0xe42   : > { %v1525_v8 = vadd.f32 %v1523_v54, %v1431_v48 }
 0xe44   : > { %2083 = vtanh.f32 %v1525_v8 }
 0xe4e   : > { %v2084_v9 = vpop.eup %2083 }
 0xe4f   : > { %1529 = vrot.lane.b32.xlu0 %v2084_v9, %s2225_s22 }
 0xec1   : > { %v1530_v10 = vpop.permute.xlu0 %1529 }
 0xec2   : > { %v1532_v3 = vmul.f32 %v1530_v10, %v1527_v58 }
 0xec4   : > { %v1534_v19 = vadd.f32 %v1533_v11, %v1532_v3 }
 0xec6   : > { %v1535_v20 = vmul.f32 %v1534_v19, %v2644_v35 }
 0xec8   : > { %1537 = vrot.lane.b32.xlu1 %v1535_v20, %s2225_s22 }
 0xf3a   : > { %v1538_v21 = vpop.permute.xlu1 %1537 }
 0xf3b   : > { %1540 = vst.msk [vmem:[%s418_s28] sm:$0xff] %vm478_vm1, %v1538_v21 }
 0xf3c   : > { %2156 = shalt.err (!%p2153_p9)
}
 0xf3d   : > { %s2157_s18 = scalar_lea.hbm %s2765_s29, 128  ;;  %s2161_s19 = scalar_lea.hbm %s2820_s10, 256 }
 0xf3e   : > { %p2158_p1 = scmp.ne.s32.totalorder %s2765_s29, %s2157_s18  ;;  %p2162_p11 = scmp.lt.u32.totalorder %s2765_s29, %s2820_s10 }
 0xf3f   : > { %p2163_p2 = scmp.lt.u32.totalorder %s2161_s19, %s2157_s18  ;;  %p2165_p6 = scmp.lt.u32.totalorder %s2157_s18, %s2765_s29 }
 0xf40   : > { %p2159_p0 = pnand %p2158_p1, %p2376_p12 }
 0xf41   : > { %p2164_p4 = por %p2163_p2, %p2162_p11 }
 0xf42   : > { %p2160_p5 = pneg %p2159_p0 }
 0xf43   : > { %p2166_p8 = por %p2165_p6, %p2164_p4 }
 0xf45   : > { %p2167_p10 = pnand %p2166_p8, %p2160_p5 }
 0xf47   : > { %2170 = shalt.err (!%p2167_p10)
}
 0xf48   : > { %1990 = dma.vmem_to_hbm [thread:$0]  (%p2376_p12), %s2767_s23, 128, %s2765_s29, %s1542_s25  }
 0xf49 PF: > { %s2844_s24 = sld [smem:[#allocation11_spill]]  ;;  %s2845_s13 = sld [smem:[#allocation12_spill]] }
 0xf4a   : > { %p2847_p3 = scmp.ge.s32.totalorder %s2213_s16, 2 }
 0xf4f   : > { %s1567_s26 = sand.u32 1, %s2844_s24   ;;  %p2846_p13 = scmp.ne.s32.totalorder %s2845_s13, 0 }
 0xf50   : > { %s1568_s17 = scalar_lea.sflag [#allocation4], %s1567_s26 }
 0xf51   : > { %p2001_p7 = pnand %p2847_p3, %p2846_p13 }
 0xf53   : > { %2196 = dma.done.wait (!%p2001_p7), %s1568_s17, 128  }
 0xf54   : > { %2198 = vsyncadd (!%p2001_p7), %s1568_s17, 4294967168  ;;  %s2848_s16 = sld [smem:[#allocation13_spill]]  ;;  %s2849_s13 = smov %s2205_s14 }
 0xf55   : > { %s2850_s14 = smov %s2209_s15  ;;  %s2851_s15 = smov %s2372_s11 }
 0xf5a   : > { %p24_p9 = scmp.ge.s32.totalorder %s2848_s16, 4  }
 0xf5c   :  { %26 = sbr.rel (!%p24_p9) target bundleno = 6 (0x6), region = 115 }
 0xf63   :  { %1573 = vsyncpa [#allocation3], 1 }
 0xf64   :  { %1575 = vsyncpa [#allocation3 + $0x1], 1 }
 0xf65   :  { %1576 = vsyncpa [#allocation6], 1 }
 0xf66   :  { %1577 = vsyncpa [#allocation4], 1 }
 0xf67   :  { %1579 = vsyncpa [#allocation4 + $0x1], 1 }

</bundles_post_ra>
